<compile_context>
chip_gen: v7x
topology: tpu7x:2x2x1
jax: 0.10.0
libtpu: 0.0.40
codegen_flags: <defaults>
</compile_context>

<pallas_src>
import functools
import math

import numpy as np
import jax
import jax.numpy as jnp
from jax import lax
from jax.experimental import pallas as pl
from jax.experimental.pallas import tpu as pltpu


def _subcenter_arcface_kernel(labels_ref, xq_ref, w_ref,          # inputs
                              loss_ref, corr_ref,                 # per-row outputs
                              m_sc, l_sc, amax_sc, aidx_sc, tgt_sc,   # scratch
                              *, scale, inv_scale, cos_m, sin_m, th, mmm,
                              easy_margin, n_classes):
    c = pl.program_id(1)
    n_sub = w_ref.shape[0]
    tc = w_ref.shape[2]

    @pl.when(c == 0)
    def _init():
        m_sc[...] = jnp.full(m_sc.shape, -jnp.inf, m_sc.dtype)
        l_sc[...] = jnp.zeros(l_sc.shape, l_sc.dtype)
        amax_sc[...] = jnp.full(amax_sc.shape, -jnp.inf, amax_sc.dtype)
        aidx_sc[...] = jnp.zeros(aidx_sc.shape, aidx_sc.dtype)
        tgt_sc[...] = jnp.zeros(tgt_sc.shape, tgt_sc.dtype)

    # Activations are already normalized * s and in the MXU dtype (bf16).
    xq = xq_ref[...]                                             # (bn, E)

    # Sub-center logits: S plain bf16 (bn,E)x(E,tc) matmuls (f32 accumulate),
    # elementwise max.  z == s * max_s cosine.  W is already unit-normalized.
    z = None
    for s_idx in range(n_sub):
        z_s = jnp.dot(xq, w_ref[s_idx], preferred_element_type=jnp.float32)
        z = z_s if z is None else jnp.maximum(z, z_s)

    labels = labels_ref[...]                                     # (bn, 1) int32
    # (1, tc) global class ids; broadcasts against (bn, 1)/(bn, tc).
    col = c * tc + lax.broadcasted_iota(jnp.int32, (1, tc), 1)

    # --- running argmax of the sub-center-maxed cosine (first occurrence) ---
    tile_max = jnp.max(z, axis=-1, keepdims=True)                # (bn, 1)
    tile_arg = jnp.min(jnp.where(z == tile_max, col, n_classes),
                       axis=-1, keepdims=True)                   # (bn, 1)
    better = tile_max > amax_sc[...]
    aidx_sc[...] = jnp.where(better, tile_arg, aidx_sc[...])
    amax_sc[...] = jnp.where(better, tile_max, amax_sc[...])

    # --- accumulate the scaled target logit (each label hits exactly one tile)
    is_tgt = col == labels                                       # (bn, tc)
    tgt_sc[...] += jnp.sum(jnp.where(is_tgt, z, 0.0), axis=-1, keepdims=True)

    # --- online logsumexp of the UNadjusted logits z = s*cos ---
    # The margin only lowers the target logit, so tile_max stays an exact
    # upper bound for the final output logits -> numerically stable.
    new_m = jnp.maximum(m_sc[...], tile_max)
    l_sc[...] = (jnp.exp(m_sc[...] - new_m) * l_sc[...]
                 + jnp.sum(jnp.exp(z - new_m), axis=-1, keepdims=True))
    m_sc[...] = new_m

    @pl.when(c == pl.num_programs(1) - 1)
    def _finalize():
        z_tgt = tgt_sc[...]                                      # s * target cosine
        t = z_tgt * inv_scale                                    # target cosine
        sine = jnp.sqrt(jnp.maximum(1.0 - t * t, 0.0))
        cos_plus = t * cos_m - sine * sin_m
        if easy_margin:
            cos_plus = jnp.where(t > 0.0, cos_plus, t)
        else:
            cos_plus = jnp.where(t > th, cos_plus, t - mmm)
        z_out = scale * cos_plus                                 # adjusted target logit
        m_run = m_sc[...]
        # Swap the target term of the sum-exp: remove the plain term, add the
        # margin-adjusted one.  Relies on cancellation against the accumulated
        # tail; relative error is a few ulp for s*m ~ 6 (s=32, m=0.2) and is
        # guarded by the clamp below for extreme (s, m) configurations.
        l_adj = l_sc[...] + jnp.exp(z_out - m_run) - jnp.exp(z_tgt - m_run)
        l_adj = jnp.maximum(l_adj, 1e-30)
        lse = m_run + jnp.log(l_adj)
        # NOTE: outputs are (bn, 1) columns; lane-dense (1, bn) blocks would be
        # marginally better but the outputs are tiny relative to W traffic.
        loss_ref[...] = lse - z_out                              # per-row CE
        corr_ref[...] = (aidx_sc[...] == labels).astype(jnp.int32)


def _largest_divisor(total, cap, granule):
    """Largest d <= cap with total % d == 0 and d % granule == 0 (or None)."""
    for d in range(min(cap, total), 0, -1):
        if total % d == 0 and d % granule == 0:
            return d
    return None


def subcenter_arcface_loss(x, W, labels, *, s=32.0, m=0.2, easy_margin=False,
                           class_tile=None, batch_tile=None,
                           mxu_dtype=jnp.bfloat16):
    """x: (N, E) embeddings, W: (C, S, E) sub-center class weights, labels: (N,)."""
    N, E = x.shape
    C, S, E2 = W.shape
    assert E == E2, "embedding dims of x and W must match"

    # --- per-generation VMEM-aware defaults -------------------------------
    try:
        vmem_cap = int(pltpu.get_tpu_info().vmem_capacity_bytes)
    except Exception:
        vmem_cap = 64 * 1024 * 1024                  # conservative (v7x-sized)
    big_vmem = vmem_cap >= 100 * 1024 * 1024         # v5e/v6e 128 MiB vs v7x 64 MiB

    if batch_tile is None:
        batch_tile = 512 if big_vmem else 256
    if class_tile is None:
        # v6e sweet spot ~1024; on v5e prefer 512 (pass class_tile=512).
        class_tile = 1024 if big_vmem else 512

    bn = N if N <= batch_tile else _largest_divisor(N, batch_tile, 8)
    ct = C if C <= class_tile else _largest_divisor(C, class_tile, 128)
    # TODO(synk): pad + mask N / C in the wrapper for shapes with no suitable
    # divisor instead of asserting.
    assert bn is not None, "no batch tile found; pad N to a multiple of 8"
    assert ct is not None, "no class tile found; pad C to a multiple of 128"

    # --- one fused preprocessing pass per operand -------------------------
    # x: normalize over E (f32), fold the softmax scale s in, cast to bf16.
    inv_nx = lax.rsqrt(jnp.sum(x * x, axis=-1, keepdims=True) + 1e-12)
    xq = (float(s) * x * inv_nx).astype(mxu_dtype)               # (N, E) bf16
    # W: normalize over E (f32), transpose to (S, E, C), cast to bf16 -- a
    # single pass over W (XLA fuses normalize+cast into the transpose copy).
    # TODO(synk): in a training loop, keep the parameter in (S, E, C) bf16
    # layout between steps to avoid re-doing this pass per call.
    inv_nw = lax.rsqrt(jnp.sum(W * W, axis=-1, keepdims=True) + 1e-12)
    Wt = jnp.transpose(W * inv_nw, (1, 2, 0)).astype(mxu_dtype)  # (S, E, C) bf16

    # Pad E only to the bf16 sublane granule (16); E=192 already qualifies.
    E_pad = ((E + 15) // 16) * 16
    if E_pad != E:
        xq = jnp.pad(xq, ((0, 0), (0, E_pad - E)))
        Wt = jnp.pad(Wt, ((0, 0), (0, E_pad - E), (0, 0)))

    labels2 = labels.reshape(N, 1).astype(jnp.int32)

    kernel = functools.partial(
        _subcenter_arcface_kernel,
        scale=float(s), inv_scale=float(1.0 / s),
        cos_m=float(math.cos(m)), sin_m=float(math.sin(m)),
        th=float(math.cos(math.pi - m)), mmm=float(math.sin(math.pi - m) * m),
        easy_margin=bool(easy_margin), n_classes=C)

    itemsize = jnp.dtype(mxu_dtype).itemsize
    # VMEM budget: bf16 W double buffer + bf16 x double buffer + ~8 live
    # (bn, ct) f32 temporaries + small per-row scratch/outputs + headroom.
    vmem_need = (2 * S * E_pad * ct * itemsize
                 + 2 * bn * E_pad * itemsize
                 + 8 * bn * ct * 4
                 + 16 * bn * 4
                 + (1 << 20))
    vmem_limit = int(min(max(vmem_need, 16 * 1024 * 1024),
                         int(0.85 * vmem_cap)))

    # TODO(synk): for very large N (> ~1-2k rows), restructure with the class
    # axis as the outer grid dim and full-batch accumulators in VMEM so W is
    # streamed exactly once; likewise shard the class axis across the two v7x
    # TensorCores and combine the per-shard (m, l, tgt, argmax) partials.
    row_loss, row_corr = pl.pallas_call(
        kernel,
        out_shape=(jax.ShapeDtypeStruct((N, 1), jnp.float32),
                   jax.ShapeDtypeStruct((N, 1), jnp.int32)),
        grid_spec=pltpu.PrefetchScalarGridSpec(
            num_scalar_prefetch=0,
            grid=(N // bn, C // ct),
            in_specs=[
                pl.BlockSpec((bn, 1), lambda i, c: (i, 0)),            # labels
                pl.BlockSpec((bn, E_pad), lambda i, c: (i, 0)),        # x (resident per batch tile)
                pl.BlockSpec((S, E_pad, ct), lambda i, c: (0, 0, c)),  # W class tile
            ],
            out_specs=[
                pl.BlockSpec((bn, 1), lambda i, c: (i, 0)),            # per-row loss
                pl.BlockSpec((bn, 1), lambda i, c: (i, 0)),            # per-row correct
            ],
            scratch_shapes=[
                pltpu.VMEM((bn, 1), jnp.float32),   # running max (LSE)
                pltpu.VMEM((bn, 1), jnp.float32),   # running sum-exp
                pltpu.VMEM((bn, 1), jnp.float32),   # running max logit (argmax)
                pltpu.VMEM((bn, 1), jnp.int32),     # running argmax index
                pltpu.VMEM((bn, 1), jnp.float32),   # scaled target logit
            ]),
        compiler_params=pltpu.CompilerParams(
            dimension_semantics=("parallel", "arbitrary"),
            vmem_limit_bytes=vmem_limit),
    )(labels2, xq, Wt)

    # TODO(synk): optional per-class CrossEntropyLoss weights (ce_w) are not
    # implemented (the module default is ce_w=None).
    loss = jnp.mean(row_loss)
    acc1 = jnp.sum(row_corr)
    return loss, acc1


def _reference(x, W, labels, s, m, easy_margin=False, mxu_dtype=None):
    """Pure-JAX port of the PyTorch module's forward.  With mxu_dtype set it
    mimics the kernel's MXU input precision (x scaled by s before the bf16
    cast, W normalized then cast, f32 accumulation)."""
    xn = x / jnp.maximum(jnp.linalg.norm(x, axis=-1, keepdims=True), 1e-12)
    wn = W / jnp.maximum(jnp.linalg.norm(W, axis=-1, keepdims=True), 1e-12)
    if mxu_dtype is not None:
        xn = (s * xn).astype(mxu_dtype).astype(jnp.float32) / s
        wn = wn.astype(mxu_dtype).astype(jnp.float32)
    cosine = jnp.max(jnp.einsum('ne,cse->ncs', xn, wn), axis=-1)
    idx = jnp.argmax(cosine, axis=1)
    acc1 = jnp.sum((idx == labels).astype(jnp.int32))
    sine = jnp.sqrt(jnp.maximum(1.0 - cosine ** 2, 0.0))
    cos_m, sin_m = math.cos(m), math.sin(m)
    th = math.cos(math.pi - m)
    mmm = math.sin(math.pi - m) * m
    cos_plus = cosine * cos_m - sine * sin_m
    if easy_margin:
        cos_plus = jnp.where(cosine > 0, cos_plus, cosine)
    else:
        cos_plus = jnp.where(cosine > th, cos_plus, cosine - mmm)
    one_hot = jax.nn.one_hot(labels, W.shape[0], dtype=cosine.dtype)
    out = (one_hot * cos_plus + (1.0 - one_hot) * cosine) * s
    logp = jax.nn.log_softmax(out, axis=-1)
    loss = -jnp.mean(logp[jnp.arange(x.shape[0]), labels])
    return loss, acc1


if __name__ == "__main__":
    # Small shapes consistent with the module: emb_size=192, sub-centers=3,
    # a modest class count and batch.
    N, E, C, S = 8, 192, 1024, 3
    s_scale, margin = 32.0, 0.2

    key = jax.random.PRNGKey(0)
    kx, kw, kl = jax.random.split(key, 3)

    x = jax.random.normal(kx, (N, E), dtype=jnp.float32)
    # Deterministic xavier_uniform_-style init for W (fan_in=S*E, fan_out=C*E).
    bound = float(np.sqrt(6.0 / (S * E + C * E)))
    W = jax.random.uniform(kw, (C, S, E), dtype=jnp.float32,
                           minval=-bound, maxval=bound)
    labels = jax.random.randint(kl, (N,), 0, C, dtype=jnp.int32)

    # class_tile=256 -> 4 class-tile steps, exercising the online accumulation.
    loss, acc1 = subcenter_arcface_loss(x, W, labels, s=s_scale, m=margin,
                                        class_tile=256)
    loss = jax.block_until_ready(loss)
    acc1 = jax.block_until_ready(acc1)

    ref_loss, ref_acc = _reference(x, W, labels, s_scale, margin,
                                   mxu_dtype=jnp.bfloat16)
    np.testing.assert_allclose(np.asarray(loss), np.asarray(ref_loss),
                               rtol=1e-2, atol=1e-2)
    assert int(acc1) == int(ref_acc), (int(acc1), int(ref_acc))

    print("KERNEL_OK")
</pallas_src>

<mosaic_0001>
module attributes {stable_mosaic.version = 11 : i64} {
  func.func @_subcenter_arcface_kernel(%arg0: i32, %arg1: i32, %arg2: memref<8x1xi32, #tpu.memory_space<vmem>>, %arg3: memref<8x192xbf16, #tpu.memory_space<vmem>>, %arg4: memref<3x192x256xbf16, #tpu.memory_space<vmem>>, %arg5: memref<8x1xf32, #tpu.memory_space<vmem>>, %arg6: memref<8x1xi32, #tpu.memory_space<vmem>>, %arg7: memref<8x1xf32, #tpu.memory_space<vmem>>, %arg8: memref<8x1xf32, #tpu.memory_space<vmem>>, %arg9: memref<8x1xf32, #tpu.memory_space<vmem>>, %arg10: memref<8x1xi32, #tpu.memory_space<vmem>>, %arg11: memref<8x1xf32, #tpu.memory_space<vmem>>) attributes {dimension_semantics = [#tpu.dimension_semantics<parallel>, #tpu.dimension_semantics<arbitrary>], iteration_bounds = array<i64: 1, 4>, scalar_prefetch = 0 : i64, scratch_operands = 5 : i64, tpu.core_type = #tpu.core_type<tc>, window_params = [{transform_indices = @transform_0, window_bounds = array<i64: 8, 1>}, {transform_indices = @transform_1, window_bounds = array<i64: 8, 192>}, {transform_indices = @transform_2, window_bounds = array<i64: 3, 192, 256>}, {transform_indices = @transform_3, window_bounds = array<i64: 8, 1>}, {transform_indices = @transform_4, window_bounds = array<i64: 8, 1>}]} {
    %c0_i32 = arith.constant 0 : i32
    %0 = arith.cmpi eq, %arg1, %c0_i32 : i32
    %1 = arith.extui %0 : i1 to i32
    %c0_i32_0 = arith.constant 0 : i32
    %2 = arith.cmpi ne, %1, %c0_i32_0 : i32
    scf.if %2 {
      %cst_43 = arith.constant 0xFF800000 : f32
      %66 = vector.broadcast %cst_43 : f32 to vector<8x1xf32>
      %c0_44 = arith.constant 0 : index
      %c0_45 = arith.constant 0 : index
      %67 = vector.load %arg7[%c0_44, %c0_45] : memref<8x1xf32, #tpu.memory_space<vmem>>, vector<8x1xf32>
      tpu.vector_store %arg7[%c0_44, %c0_45], %66 {strides = array<i32>} : memref<8x1xf32, #tpu.memory_space<vmem>>, vector<8x1xf32>,
      %cst_46 = arith.constant 0.000000e+00 : f32
      %68 = vector.broadcast %cst_46 : f32 to vector<8x1xf32>
      %c0_47 = arith.constant 0 : index
      %c0_48 = arith.constant 0 : index
      %69 = vector.load %arg8[%c0_47, %c0_48] : memref<8x1xf32, #tpu.memory_space<vmem>>, vector<8x1xf32>
      tpu.vector_store %arg8[%c0_47, %c0_48], %68 {strides = array<i32>} : memref<8x1xf32, #tpu.memory_space<vmem>>, vector<8x1xf32>,
      %cst_49 = arith.constant 0xFF800000 : f32
      %70 = vector.broadcast %cst_49 : f32 to vector<8x1xf32>
      %c0_50 = arith.constant 0 : index
      %c0_51 = arith.constant 0 : index
      %71 = vector.load %arg9[%c0_50, %c0_51] : memref<8x1xf32, #tpu.memory_space<vmem>>, vector<8x1xf32>
      tpu.vector_store %arg9[%c0_50, %c0_51], %70 {strides = array<i32>} : memref<8x1xf32, #tpu.memory_space<vmem>>, vector<8x1xf32>,
      %c0_i32_52 = arith.constant 0 : i32
      %72 = vector.broadcast %c0_i32_52 : i32 to vector<8x1xi32>
      %c0_53 = arith.constant 0 : index
      %c0_54 = arith.constant 0 : index
      %73 = vector.load %arg10[%c0_53, %c0_54] : memref<8x1xi32, #tpu.memory_space<vmem>>, vector<8x1xi32>
      tpu.vector_store %arg10[%c0_53, %c0_54], %72 {strides = array<i32>} : memref<8x1xi32, #tpu.memory_space<vmem>>, vector<8x1xi32>,
      %cst_55 = arith.constant 0.000000e+00 : f32
      %74 = vector.broadcast %cst_55 : f32 to vector<8x1xf32>
      %c0_56 = arith.constant 0 : index
      %c0_57 = arith.constant 0 : index
      %75 = vector.load %arg11[%c0_56, %c0_57] : memref<8x1xf32, #tpu.memory_space<vmem>>, vector<8x1xf32>
      tpu.vector_store %arg11[%c0_56, %c0_57], %74 {strides = array<i32>} : memref<8x1xf32, #tpu.memory_space<vmem>>, vector<8x1xf32>,
    } else {
    }
    %c0 = arith.constant 0 : index
    %c0_1 = arith.constant 0 : index
    %3 = vector.load %arg3[%c0, %c0_1] : memref<8x192xbf16, #tpu.memory_space<vmem>>, vector<8x192xbf16>
    %c0_2 = arith.constant 0 : index
    %c0_3 = arith.constant 0 : index
    %c0_4 = arith.constant 0 : index
    %4 = vector.load %arg4[%c0_2, %c0_3, %c0_4] : memref<3x192x256xbf16, #tpu.memory_space<vmem>>, vector<1x192x256xbf16>
    %5 = vector.shape_cast %4 : vector<1x192x256xbf16> to vector<192x256xbf16>
    %cst = arith.constant dense<0.000000e+00> : vector<8x256xf32>
    %6 = tpu.matmul %3, %5, %cst {dimension_numbers = #tpu.dot_dimension_numbers<[1], [0], [0], [1], [0, 0, 1, 1], [], []>} : vector<8x192xbf16>, vector<192x256xbf16>, vector<8x256xf32> -> vector<8x256xf32>
    %c1 = arith.constant 1 : index
    %c0_5 = arith.constant 0 : index
    %c0_6 = arith.constant 0 : index
    %7 = vector.load %arg4[%c1, %c0_5, %c0_6] : memref<3x192x256xbf16, #tpu.memory_space<vmem>>, vector<1x192x256xbf16>
    %8 = vector.shape_cast %7 : vector<1x192x256xbf16> to vector<192x256xbf16>
    %cst_7 = arith.constant dense<0.000000e+00> : vector<8x256xf32>
    %9 = tpu.matmul %3, %8, %cst_7 {dimension_numbers = #tpu.dot_dimension_numbers<[1], [0], [0], [1], [0, 0, 1, 1], [], []>} : vector<8x192xbf16>, vector<192x256xbf16>, vector<8x256xf32> -> vector<8x256xf32>
    %10 = arith.maximumf %6, %9 : vector<8x256xf32>
    %c2 = arith.constant 2 : index
    %c0_8 = arith.constant 0 : index
    %c0_9 = arith.constant 0 : index
    %11 = vector.load %arg4[%c2, %c0_8, %c0_9] : memref<3x192x256xbf16, #tpu.memory_space<vmem>>, vector<1x192x256xbf16>
    %12 = vector.shape_cast %11 : vector<1x192x256xbf16> to vector<192x256xbf16>
    %cst_10 = arith.constant dense<0.000000e+00> : vector<8x256xf32>
    %13 = tpu.matmul %3, %12, %cst_10 {dimension_numbers = #tpu.dot_dimension_numbers<[1], [0], [0], [1], [0, 0, 1, 1], [], []>} : vector<8x192xbf16>, vector<192x256xbf16>, vector<8x256xf32> -> vector<8x256xf32>
    %14 = arith.maximumf %10, %13 : vector<8x256xf32>
    %c0_11 = arith.constant 0 : index
    %c0_12 = arith.constant 0 : index
    %15 = vector.load %arg2[%c0_11, %c0_12] : memref<8x1xi32, #tpu.memory_space<vmem>>, vector<8x1xi32>
    %c256_i32 = arith.constant 256 : i32
    %16 = arith.muli %arg1, %c256_i32 : i32
    %17 = tpu.iota {dimensions = array<i32: 1>} : vector<1x256xi32>
    %18 = vector.broadcast %16 : i32 to vector<1x256xi32>
    %19 = arith.addi %18, %17 : vector<1x256xi32>
    %cst_13 = arith.constant dense<0xFF800000> : vector<8xf32>
    %20 = vector.multi_reduction <maximumf>, %14, %cst_13 [1] : vector<8x256xf32> to vector<8xf32>
    %21 = vector.shape_cast %20 : vector<8xf32> to vector<8x1xf32>
    %22 = vector.broadcast %21 : vector<8x1xf32> to vector<8x256xf32>
    %23 = arith.cmpf oeq, %14, %22 : vector<8x256xf32>
    %c1024_i32 = arith.constant 1024 : i32
    %24 = vector.shape_cast %19 : vector<1x256xi32> to vector<1x256xi32>
    %25 = vector.broadcast %24 : vector<1x256xi32> to vector<8x256xi32>
    %26 = vector.broadcast %c1024_i32 : i32 to vector<8x256xi32>
    %27 = arith.select %23, %25, %26 : vector<8x256xi1>, vector<8x256xi32>
    %cst_14 = arith.constant dense<2147483647> : vector<8xi32>
    %28 = vector.multi_reduction <minsi>, %27, %cst_14 [1] : vector<8x256xi32> to vector<8xi32>
    %29 = vector.shape_cast %28 : vector<8xi32> to vector<8x1xi32>
    %c0_15 = arith.constant 0 : index
    %c0_16 = arith.constant 0 : index
    %30 = vector.load %arg9[%c0_15, %c0_16] : memref<8x1xf32, #tpu.memory_space<vmem>>, vector<8x1xf32>
    %31 = arith.cmpf ogt, %21, %30 : vector<8x1xf32>
    %c0_17 = arith.constant 0 : index
    %c0_18 = arith.constant 0 : index
    %32 = vector.load %arg10[%c0_17, %c0_18] : memref<8x1xi32, #tpu.memory_space<vmem>>, vector<8x1xi32>
    %33 = arith.select %31, %29, %32 : vector<8x1xi1>, vector<8x1xi32>
    %c0_19 = arith.constant 0 : index
    %c0_20 = arith.constant 0 : index
    %34 = vector.load %arg10[%c0_19, %c0_20] : memref<8x1xi32, #tpu.memory_space<vmem>>, vector<8x1xi32>
    tpu.vector_store %arg10[%c0_19, %c0_20], %33 {strides = array<i32>} : memref<8x1xi32, #tpu.memory_space<vmem>>, vector<8x1xi32>,
    %c0_21 = arith.constant 0 : index
    %c0_22 = arith.constant 0 : index
    %35 = vector.load %arg9[%c0_21, %c0_22] : memref<8x1xf32, #tpu.memory_space<vmem>>, vector<8x1xf32>
    %36 = arith.select %31, %21, %35 : vector<8x1xi1>, vector<8x1xf32>
    %c0_23 = arith.constant 0 : index
    %c0_24 = arith.constant 0 : index
    %37 = vector.load %arg9[%c0_23, %c0_24] : memref<8x1xf32, #tpu.memory_space<vmem>>, vector<8x1xf32>
    tpu.vector_store %arg9[%c0_23, %c0_24], %36 {strides = array<i32>} : memref<8x1xf32, #tpu.memory_space<vmem>>, vector<8x1xf32>,
    %38 = vector.broadcast %19 : vector<1x256xi32> to vector<8x256xi32>
    %39 = vector.broadcast %15 : vector<8x1xi32> to vector<8x256xi32>
    %40 = arith.cmpi eq, %38, %39 : vector<8x256xi32>
    %c0_25 = arith.constant 0 : index
    %c0_26 = arith.constant 0 : index
    %41 = vector.load %arg11[%c0_25, %c0_26] : memref<8x1xf32, #tpu.memory_space<vmem>>, vector<8x1xf32>
    %cst_27 = arith.constant 0.000000e+00 : f32
    %42 = vector.broadcast %cst_27 : f32 to vector<8x256xf32>
    %43 = arith.select %40, %14, %42 : vector<8x256xi1>, vector<8x256xf32>
    %cst_28 = arith.constant dense<0.000000e+00> : vector<8xf32>
    %44 = vector.multi_reduction <add>, %43, %cst_28 [1] : vector<8x256xf32> to vector<8xf32>
    %45 = vector.shape_cast %44 : vector<8xf32> to vector<8x1xf32>
    %46 = arith.addf %41, %45 : vector<8x1xf32>
    %c0_29 = arith.constant 0 : index
    %c0_30 = arith.constant 0 : index
    %47 = vector.load %arg11[%c0_29, %c0_30] : memref<8x1xf32, #tpu.memory_space<vmem>>, vector<8x1xf32>
    tpu.vector_store %arg11[%c0_29, %c0_30], %46 {strides = array<i32>} : memref<8x1xf32, #tpu.memory_space<vmem>>, vector<8x1xf32>,
    %c0_31 = arith.constant 0 : index
    %c0_32 = arith.constant 0 : index
    %48 = vector.load %arg7[%c0_31, %c0_32] : memref<8x1xf32, #tpu.memory_space<vmem>>, vector<8x1xf32>
    %49 = arith.maximumf %48, %21 : vector<8x1xf32>
    %c0_33 = arith.constant 0 : index
    %c0_34 = arith.constant 0 : index
    %50 = vector.load %arg7[%c0_33, %c0_34] : memref<8x1xf32, #tpu.memory_space<vmem>>, vector<8x1xf32>
    %51 = arith.subf %50, %49 : vector<8x1xf32>
    %52 = math.exp %51 : vector<8x1xf32>
    %c0_35 = arith.constant 0 : index
    %c0_36 = arith.constant 0 : index
    %53 = vector.load %arg8[%c0_35, %c0_36] : memref<8x1xf32, #tpu.memory_space<vmem>>, vector<8x1xf32>
    %54 = arith.mulf %52, %53 : vector<8x1xf32>
    %55 = vector.broadcast %49 : vector<8x1xf32> to vector<8x256xf32>
    %56 = arith.subf %14, %55 : vector<8x256xf32>
    %57 = math.exp %56 : vector<8x256xf32>
    %cst_37 = arith.constant dense<0.000000e+00> : vector<8xf32>
    %58 = vector.multi_reduction <add>, %57, %cst_37 [1] : vector<8x256xf32> to vector<8xf32>
    %59 = vector.shape_cast %58 : vector<8xf32> to vector<8x1xf32>
    %60 = arith.addf %54, %59 : vector<8x1xf32>
    %c0_38 = arith.constant 0 : index
    %c0_39 = arith.constant 0 : index
    %61 = vector.load %arg8[%c0_38, %c0_39] : memref<8x1xf32, #tpu.memory_space<vmem>>, vector<8x1xf32>
    tpu.vector_store %arg8[%c0_38, %c0_39], %60 {strides = array<i32>} : memref<8x1xf32, #tpu.memory_space<vmem>>, vector<8x1xf32>,
    %c0_40 = arith.constant 0 : index
    %c0_41 = arith.constant 0 : index
    %62 = vector.load %arg7[%c0_40, %c0_41] : memref<8x1xf32, #tpu.memory_space<vmem>>, vector<8x1xf32>
    tpu.vector_store %arg7[%c0_40, %c0_41], %49 {strides = array<i32>} : memref<8x1xf32, #tpu.memory_space<vmem>>, vector<8x1xf32>,
    %c3_i32 = arith.constant 3 : i32
    %63 = arith.cmpi eq, %arg1, %c3_i32 : i32
    %64 = arith.extui %63 : i1 to i32
    %c0_i32_42 = arith.constant 0 : i32
    %65 = arith.cmpi ne, %64, %c0_i32_42 : i32
    scf.if %65 {
      %c0_43 = arith.constant 0 : index
      %c0_44 = arith.constant 0 : index
      %66 = vector.load %arg11[%c0_43, %c0_44] : memref<8x1xf32, #tpu.memory_space<vmem>>, vector<8x1xf32>
      %cst_45 = arith.constant 3.125000e-02 : f32
      %67 = vector.broadcast %cst_45 : f32 to vector<8x1xf32>
      %68 = arith.mulf %66, %67 : vector<8x1xf32>
      %69 = arith.mulf %68, %68 : vector<8x1xf32>
      %cst_46 = arith.constant 1.000000e+00 : f32
      %70 = vector.broadcast %cst_46 : f32 to vector<8x1xf32>
      %71 = arith.subf %70, %69 : vector<8x1xf32>
      %cst_47 = arith.constant 0.000000e+00 : f32
      %72 = vector.broadcast %cst_47 : f32 to vector<8x1xf32>
      %73 = arith.maximumf %71, %72 : vector<8x1xf32>
      %74 = math.sqrt %73 : vector<8x1xf32>
      %cst_48 = arith.constant 0.980066597 : f32
      %75 = vector.broadcast %cst_48 : f32 to vector<8x1xf32>
      %76 = arith.mulf %68, %75 : vector<8x1xf32>
      %cst_49 = arith.constant 0.198669329 : f32
      %77 = vector.broadcast %cst_49 : f32 to vector<8x1xf32>
      %78 = arith.mulf %74, %77 : vector<8x1xf32>
      %79 = arith.subf %76, %78 : vector<8x1xf32>
      %cst_50 = arith.constant -0.980066597 : f32
      %80 = vector.broadcast %cst_50 : f32 to vector<8x1xf32>
      %81 = arith.cmpf ogt, %68, %80 : vector<8x1xf32>
      %cst_51 = arith.constant 0.0397338644 : f32
      %82 = vector.broadcast %cst_51 : f32 to vector<8x1xf32>
      %83 = arith.subf %68, %82 : vector<8x1xf32>
      %84 = arith.select %81, %79, %83 : vector<8x1xi1>, vector<8x1xf32>
      %cst_52 = arith.constant 3.200000e+01 : f32
      %85 = vector.broadcast %cst_52 : f32 to vector<8x1xf32>
      %86 = arith.mulf %85, %84 : vector<8x1xf32>
      %c0_53 = arith.constant 0 : index
      %c0_54 = arith.constant 0 : index
      %87 = vector.load %arg7[%c0_53, %c0_54] : memref<8x1xf32, #tpu.memory_space<vmem>>, vector<8x1xf32>
      %c0_55 = arith.constant 0 : index
      %c0_56 = arith.constant 0 : index
      %88 = vector.load %arg8[%c0_55, %c0_56] : memref<8x1xf32, #tpu.memory_space<vmem>>, vector<8x1xf32>
      %89 = arith.subf %86, %87 : vector<8x1xf32>
      %90 = math.exp %89 : vector<8x1xf32>
      %91 = arith.addf %88, %90 : vector<8x1xf32>
      %92 = arith.subf %66, %87 : vector<8x1xf32>
      %93 = math.exp %92 : vector<8x1xf32>
      %94 = arith.subf %91, %93 : vector<8x1xf32>
      %cst_57 = arith.constant 1.000000e-30 : f32
      %95 = vector.broadcast %cst_57 : f32 to vector<8x1xf32>
      %96 = arith.maximumf %94, %95 : vector<8x1xf32>
      %97 = math.log %96 : vector<8x1xf32>
      %98 = arith.addf %87, %97 : vector<8x1xf32>
      %99 = arith.subf %98, %86 : vector<8x1xf32>
      %c0_58 = arith.constant 0 : index
      %c0_59 = arith.constant 0 : index
      %100 = vector.load %arg5[%c0_58, %c0_59] : memref<8x1xf32, #tpu.memory_space<vmem>>, vector<8x1xf32>
      tpu.vector_store %arg5[%c0_58, %c0_59], %99 {strides = array<i32>} : memref<8x1xf32, #tpu.memory_space<vmem>>, vector<8x1xf32>,
      %c0_60 = arith.constant 0 : index
      %c0_61 = arith.constant 0 : index
      %101 = vector.load %arg10[%c0_60, %c0_61] : memref<8x1xi32, #tpu.memory_space<vmem>>, vector<8x1xi32>
      %102 = arith.cmpi eq, %101, %15 : vector<8x1xi32>
      %103 = arith.extui %102 : vector<8x1xi1> to vector<8x1xi32>
      %c0_62 = arith.constant 0 : index
      %c0_63 = arith.constant 0 : index
      %104 = vector.load %arg6[%c0_62, %c0_63] : memref<8x1xi32, #tpu.memory_space<vmem>>, vector<8x1xi32>
      tpu.vector_store %arg6[%c0_62, %c0_63], %103 {strides = array<i32>} : memref<8x1xi32, #tpu.memory_space<vmem>>, vector<8x1xi32>,
    } else {
    }
    return
  }
  func.func @transform_0(%arg0: i32, %arg1: i32) -> (i32, i32) {
    %c0_i32 = arith.constant 0 : i32
    %c0_i32_0 = arith.constant 0 : i32
    return %arg0, %c0_i32 : i32, i32
  }
  func.func @transform_1(%arg0: i32, %arg1: i32) -> (i32, i32) {
    %c0_i32 = arith.constant 0 : i32
    %c0_i32_0 = arith.constant 0 : i32
    return %arg0, %c0_i32 : i32, i32
  }
  func.func @transform_2(%arg0: i32, %arg1: i32) -> (i32, i32, i32) {
    %c0_i32 = arith.constant 0 : i32
    %c0_i32_0 = arith.constant 0 : i32
    %c0_i32_1 = arith.constant 0 : i32
    return %c0_i32, %c0_i32_0, %arg1 : i32, i32, i32
  }
  func.func @transform_3(%arg0: i32, %arg1: i32) -> (i32, i32) {
    %c0_i32 = arith.constant 0 : i32
    %c0_i32_0 = arith.constant 0 : i32
    return %arg0, %c0_i32 : i32, i32
  }
  func.func @transform_4(%arg0: i32, %arg1: i32) -> (i32, i32) {
    %c0_i32 = arith.constant 0 : i32
    %c0_i32_0 = arith.constant 0 : i32
    return %arg0, %c0_i32 : i32, i32
  }
}

</mosaic_0001>

<bundles_post_ra>
// kernel: tpu_custom_call.1
= control target key start
LH: loop header
LB: loop body
LE: loop exit
PB: predicated region body
PF: predicated region fallthrough
CT: control target
= control target key end

     0   :  { %10 = vsyncpa [#allocation8], 0  ;;  %s1865_s0 = inlined_call_operand.vmem [shape: s32[8,1], index: 0, kind: input, shape index: {}]   ;;  %s1866_s1 = inlined_call_operand.hbm [shape: bf16[8,192], index: 1, kind: input, shape index: {}]   ;;  %s1867_s2 = inlined_call_operand.hbm [shape: bf16[3,192,1024], index: 2, kind: input, shape index: {}]   ;;  %s1868_s3 = inlined_call_operand.vmem [shape: f32[8,1], index: 3, kind: output, shape index: {0}]   ;;  %s1869_s4 = inlined_call_operand.vmem [shape: s32[8,1], index: 4, kind: output, shape index: {1}]  }
   0x1   :  { %11 = vsyncpa [#allocation10], 0 }
   0x2   :  { %13 = vsyncpa [#allocation10 + $0x1], 0  ;;  %s1602_s15 = smov 0   ;;  %s1604_s16 = smov 0  }
   0x3   :  { %s1606_s17 = smov 0   ;;  %s1608_s18 = smov 0  }
   0x4   :  { %s1610_s19 = smov 0   ;;  %s1612_s20 = smov 0  }
   0x5 LB: > { %s1108_s21 = sadd.s32 4294967295, %s1565_s20   ;;  %s90_s22 = sadd.s32 1, %s1553_s17  ;;  %s1565_s20 = sphi %s1612_s20, %s19_s20   ;;  %s1561_s19 = sphi %s1610_s19, %s1889_s19   ;;  %s1557_s18 = sphi %s1608_s18, %s1888_s18   ;;  %s1553_s17 = sphi %s1606_s17, %s1887_s17   ;;  %s1549_s16 = sphi %s1604_s16, %s1886_s16   ;;  %s1545_s15 = sphi %s1602_s15, %s1885_s15  }
   0x6   : > { %p97_p0 = scmp.ne.s32.totalorder %s1553_s17, %s1549_s16  ;;  %p98_p1 = scmp.eq.s32.totalorder %s1565_s20, 0 }
   0x7   : > { %p103_p2 = scmp.ne.s32.totalorder %s1549_s16, %s1545_s15  ;;  %p1636_p3 = scmp.eq.s32.totalorder %s1108_s21, 0 }
   0x8   : > { %p99_p4 = por %p98_p1, %p97_p0  ;;  %p1109_p5 = scmp.ge.s32.totalorder %s1565_s20, 1 }
   0x9   : > { %s1875_s23 = scalar_select %p1636_p3, 1, 0 }
   0xa   : > { %p1643_p6 = por %p1636_p3, %p103_p2  ;;  %p166_p7 = scmp.lt.s32.totalorder %s1565_s20, 5 }
   0xb   : > { %s1567_s26 = smov [#allocation7]   ;;  %p1268_p10 = scmp.lt.s32.totalorder %s1565_s20, 4 }
   0xc   : > { %s1876_s24 = scalar_select %p1643_p6, 1, 0 }
   0xd   : > { %p1648_p8 = pnand %p1109_p5, %p166_p7  ;;  %s189_s27 = sshll.u32 %s1567_s26, 4  ;;  %s190_s27 = int_to_ptr.vmem [resolvable:$true] %s189_s27 }
   0xe   : > { %s200_s28 = sand.u32 1, %s1553_s17   ;;  %p1662_p12 = pnand %p1268_p10, %p99_p4 }
   0xf   : > { %s1877_s25 = scalar_select %p1648_p8, 1, 0 }
  0x10   : > { %p1259_p9 = pneg %p1648_p8  ;;  %s1453_s7 = scalar_lea.hbm %s1866_s1, 128 }
  0x11   : > { %s1879_s30 = scalar_select %p1662_p12, 1, 0 }
  0x12   : > { %p1658_p11 = pnand %p1259_p9, %p1636_p3  ;;  %p1454_p13 = scmp.ne.s32.totalorder %s1866_s1, %s1453_s7 }
  0x13   : > { %p1460_p5 = scmp.lt.u32.totalorder %s1453_s7, %s1866_s1 }
  0x14   : > { %p1455_p0 = pneg %p1658_p11 }
  0x16   : > { %p1456_p1 = pnand %p1455_p0, %p1454_p13 }
  0x18   : > { %p1457_p2 = pneg %p1456_p1 }
  0x1a   : > { %p1462_p4 = pnand %p1460_p5, %p1457_p2 }
  0x1c   : > { %1465 = shalt.err (!%p1462_p4)
}
  0x1d   : > { %s1466_s12 = scalar_lea.vmem %s190_s27, 128  ;;  %p1474_p6 = scmp.lt.s32.totalorder %s190_s27, %s190_s27 }
  0x1e   : > { %p1467_p7 = scmp.ne.s32.totalorder %s190_s27, %s1466_s12  ;;  %p1475_p3 = scmp.lt.s32.totalorder %s1466_s12, %s1466_s12 }
  0x20   : > { %p1469_p9 = pnand %p1467_p7, %p1455_p0  ;;  %p1476_p8 = por %p1475_p3, %p1474_p6 }
  0x22   : > { %p1470_p10 = pneg %p1469_p9 }
  0x24   : > { %p1477_p12 = pnand %p1476_p8, %p1470_p10 }
  0x26   : > { %1480 = shalt.err (!%p1477_p12)
}
  0x27   : > { %1262 = dma.hbm_to_vmem [thread:$0]  (!%p1658_p11), %s1866_s1, 128, %s190_s27, [#allocation8]  }
  0x28   : > { %s28_s15 = sadd.s32 1, %s1561_s19  ;;  %s1251_s21 = smul.u32 576, %s200_s28 }
  0x29   : > { %p29_p3 = scmp.ge.s32.totalorder %s28_s15, 4  ;;  %s1250_s26 = sshll.u32 %s1561_s19, 7 }
  0x2a   : > { %s1689_s6 = scalar_lea.hbm %s1867_s2, %s1250_s26  ;;  %s204_s7 = scalar_lea.vmem [#allocation9], %s1251_s21 }
  0x2b   : > { %s1891_s15 = smov (%p29_p3, %s28_s15), 0  ;;  %s211_s27 = sshll.u32 %s204_s7, 4  ;;  %s1695_s27 = int_to_ptr.vmem [resolvable:$true] %s211_s27 }
  0x2c   : > { %s87_s8 = ssub.s32 %s1561_s19, %s1891_s15  ;;  %s1704_s10 = scalar_lea.sflag [#allocation10], %s200_s28 }
  0x2d   : > { %p88_p6 = scmp.eq.s32.totalorder %s87_s8, 0  ;;  %s1481_s11 = scalar_lea.hbm %s1689_s6, 9216 }
  0x2e   : > { %p1482_p8 = scmp.ne.s32.totalorder %s1689_s6, %s1481_s11  ;;  %p1880_p11 = scmp.ne.s32.totalorder %s1879_s30, 0 }
  0x2f   : > { %s1700_s9 = scalar_select %p88_p6, %s1553_s17, %s90_s22  }
  0x30   : > { %p1483_p12 = pneg %p1880_p11  ;;  %s1486_s14 = scalar_lea.hbm %s1867_s2, 36864 }
  0x31   : > { %p1487_p1 = scmp.lt.u32.totalorder %s1689_s6, %s1867_s2  ;;  %p1488_p2 = scmp.lt.u32.totalorder %s1486_s14, %s1481_s11 }
  0x32   : > { %p1484_p13 = pnand %p1483_p12, %p1482_p8  ;;  %p1490_p4 = scmp.lt.u32.totalorder %s1481_s11, %s1689_s6 }
  0x33   : > { %p1489_p5 = por %p1488_p2, %p1487_p1 }
  0x34   : > { %p1485_p0 = pneg %p1484_p13 }
  0x35   : > { %p1491_p7 = por %p1490_p4, %p1489_p5 }
  0x37   : > { %p1492_p9 = pnand %p1491_p7, %p1485_p0 }
  0x39   : > { %1495 = shalt.err (!%p1492_p9)
}
  0x3a   : > { %s1496_s22 = scalar_lea.vmem %s1695_s27, 9216  ;;  %s1568_s28 = smov [#allocation9]  }
  0x3b   : > { %p1497_p10 = scmp.ne.s32.totalorder %s1695_s27, %s1496_s22  ;;  %s1501_s5 = sshll.u32 %s1568_s28, 4  ;;  %s1502_s5 = int_to_ptr.vmem [resolvable:$false] %s1501_s5 }
  0x3c   : > { %s1503_s29 = scalar_lea.vmem %s1502_s5, 18432  ;;  %p1504_p8 = scmp.lt.s32.totalorder %s1695_s27, %s1502_s5 }
  0x3d   : > { %p1499_p3 = pnand %p1497_p10, %p1483_p12  ;;  %p1505_p13 = scmp.lt.s32.totalorder %s1503_s29, %s1496_s22 }
  0x3f   : > { %p1500_p6 = pneg %p1499_p3  ;;  %p1506_p1 = por %p1505_p13, %p1504_p8 }
  0x41   : > { %p1507_p2 = pnand %p1506_p1, %p1500_p6 }
  0x43   : > { %1510 = shalt.err (!%p1507_p2)
}
  0x44   : > { %s1569_s7 = smov 512   ;;  %s1570_s8 = smov 128  }
  0x45   : > { %s1571_s11 = smov 8   ;;  %p1881_p12 = scmp.ne.s32.totalorder %s1877_s25, 0 }
  0x46   : > { %1266 = dma.hbm_to_vmem [thread:$0]  (!%p1880_p11), %s1689_s6, 9216, %s1695_s27, %s1704_s10, %s1569_s7, %s1570_s8, %s1571_s11  }
  0x47   : > { %223 = sbr.rel (%p1881_p12) target bundleno = 928 (0x3a0), region = 32  ;;  %p1882_p0 = scmp.ne.s32.totalorder (!%p1881_p12), %s1875_s23, 0 }
  0x4e   : > { %1536 = dma.done.wait (%p1882_p0), [#allocation8], 128  }
  0x4f   : > { %1538 = vsyncadd (%p1882_p0), [#allocation8], 4294967168  ;;  %s229_s12 = sand.u32 1, %s1549_s16   ;;  %p1883_p5 = scmp.ne.s32.totalorder %s1876_s24, 0 }
  0x50   : > { %s1252_s13 = smul.u32 576, %s229_s12  ;;  %s230_s14 = scalar_lea.sflag [#allocation10], %s229_s12 }
  0x52   : > { %s1739_s21 = scalar_lea.vmem [#allocation9], %s1252_s13 }
  0x53   : > { %1540 = dma.done.wait (%p1883_p5), %s230_s14, 9216  }
  0x54   : > { %1542 = vsyncadd (%p1883_p5), %s230_s14, 4294958080  ;;  %p1117_p11 = scmp.ne.s32.totalorder %s1557_s18, 0 }
  0x55   : > { %vm283_vm0 = vcmask (!%p1117_p11), 7168   ;;  %v1572_v0 = vmov (!%p1117_p11), -inf   ;;  %v1573_v1 = vmov (!%p1117_p11), 0.0   ;;  %v1574_v2 = vmov (!%p1117_p11), 0  }
  0x56   : > { %282 = sbr.rel (%p1117_p11) target bundleno = 93 (0x5d), region = 44  ;;  %284 = vst.msk [vmem:[#allocation2] sm:$0xff] (!%p1117_p11), %vm283_vm0, %v1572_v0  ;;  %286 = vst.msk [vmem:[#allocation4] sm:$0xff] (!%p1117_p11), %vm283_vm0, %v1572_v0 }
  0x57   : > { %285 = vst.msk [vmem:[#allocation3] sm:$0xff] (!%p1117_p11), %vm283_vm0, %v1573_v1  ;;  %288 = vst.msk [vmem:[#allocation6] sm:$0xff] (!%p1117_p11), %vm283_vm0, %v1573_v1 }
  0x58   : > { %287 = vst.msk [vmem:[#allocation5] sm:$0xff] (!%p1117_p11), %vm283_vm0, %v1574_v2 }
  0x5d PF: > { %v1329_v3 = vld [vmem:[%s1739_s21 + $0x4] ss:$8 sps:$4 sm:$0xff]   ;;  %v1333_v5 = vld [vmem:[%s1739_s21] ss:$8 sps:$4 sm:$0xff]   ;;  %v1335_v7 = vld [vmem:[%s1739_s21 + $0x14] ss:$8 sps:$4 sm:$0xff]  }
  0x5e   : > { %v1331_v4 = vld [vmem:[%s1739_s21 + $0xc4] ss:$8 sps:$4 sm:$0xff]   ;;  %444 = vmatprep.subr.bf16.mxu0 %v1329_v3  ;;  %v1334_v6 = vld [vmem:[%s1739_s21 + $0xc0] ss:$8 sps:$4 sm:$0xff]   ;;  %v1337_v8 = vld [vmem:[%s1739_s21 + $0xd4] ss:$8 sps:$4 sm:$0xff]  }
  0x5f   : > { %630 = vmatprep.subr.bf16.mxu1 %v1331_v4  ;;  %445 = vmatpush1.bf16.msra.mxu0 %v1333_v5  ;;  %v1339_v9 = vld [vmem:[%s1739_s21 + $0x10] ss:$8 sps:$4 sm:$0xff]   ;;  %v1341_v11 = vld [vmem:[%s1739_s21 + $0x24] ss:$8 sps:$4 sm:$0xff]   ;;  %v1345_v13 = vld [vmem:[%s1739_s21 + $0x20] ss:$8 sps:$4 sm:$0xff]  }
  0x60   : > { %631 = vmatpush1.bf16.msra.mxu1 %v1334_v6  ;;  %446 = vmatprep.subr.bf16.mxu0 %v1335_v7  ;;  %v1340_v10 = vld [vmem:[%s1739_s21 + $0xd0] ss:$8 sps:$4 sm:$0xff]   ;;  %v1343_v12 = vld [vmem:[%s1739_s21 + $0xe4] ss:$8 sps:$4 sm:$0xff]   ;;  %v1346_v14 = vld [vmem:[%s1739_s21 + $0xe0] ss:$8 sps:$4 sm:$0xff]  }
  0x61   : > { %632 = vmatprep.subr.bf16.mxu1 %v1337_v8  ;;  %v1347_v15 = vld [vmem:[%s1739_s21 + $0x34] ss:$8 sps:$4 sm:$0xff]   ;;  %v1351_v17 = vld [vmem:[%s1739_s21 + $0x30] ss:$8 sps:$4 sm:$0xff]   ;;  %v1353_v19 = vld [vmem:[%s1739_s21 + $0x44] ss:$8 sps:$4 sm:$0xff]  }
  0x62   : > { %v1349_v16 = vld [vmem:[%s1739_s21 + $0xf4] ss:$8 sps:$4 sm:$0xff]   ;;  %v1352_v18 = vld [vmem:[%s1739_s21 + $0xf0] ss:$8 sps:$4 sm:$0xff]   ;;  %v1355_v20 = vld [vmem:[%s1739_s21 + $0x104] ss:$8 sps:$4 sm:$0xff]  }
  0x63   : > { %447 = vmatpush1.bf16.msra.mxu0 %v1339_v9  ;;  %v1357_v21 = vld [vmem:[%s1739_s21 + $0x40] ss:$8 sps:$4 sm:$0xff]   ;;  %v1359_v23 = vld [vmem:[%s1739_s21 + $0x54] ss:$8 sps:$4 sm:$0xff]   ;;  %v1363_v25 = vld [vmem:[%s1739_s21 + $0x50] ss:$8 sps:$4 sm:$0xff]  }
  0x64   : > { %633 = vmatpush1.bf16.msra.mxu1 %v1340_v10  ;;  %448 = vmatprep.subr.bf16.mxu0 %v1341_v11  ;;  %v1358_v22 = vld [vmem:[%s1739_s21 + $0x100] ss:$8 sps:$4 sm:$0xff]   ;;  %v1361_v24 = vld [vmem:[%s1739_s21 + $0x114] ss:$8 sps:$4 sm:$0xff]   ;;  %v1364_v26 = vld [vmem:[%s1739_s21 + $0x110] ss:$8 sps:$4 sm:$0xff]  }
  0x65   : > { %634 = vmatprep.subr.bf16.mxu1 %v1343_v12  ;;  %v1365_v27 = vld [vmem:[%s1739_s21 + $0x64] ss:$8 sps:$4 sm:$0xff]   ;;  %v1369_v29 = vld [vmem:[%s1739_s21 + $0x60] ss:$8 sps:$4 sm:$0xff]   ;;  %v1371_v31 = vld [vmem:[%s1739_s21 + $0x74] ss:$8 sps:$4 sm:$0xff]  }
  0x66   : > { %v1367_v28 = vld [vmem:[%s1739_s21 + $0x124] ss:$8 sps:$4 sm:$0xff]   ;;  %v1370_v30 = vld [vmem:[%s1739_s21 + $0x120] ss:$8 sps:$4 sm:$0xff]   ;;  %v1373_v32 = vld [vmem:[%s1739_s21 + $0x134] ss:$8 sps:$4 sm:$0xff]  }
  0x67   : > { %449 = vmatpush1.bf16.msra.mxu0 %v1345_v13  ;;  %v1375_v33 = vld [vmem:[%s1739_s21 + $0x70] ss:$8 sps:$4 sm:$0xff]   ;;  %v1377_v35 = vld [vmem:[%s1739_s21 + $0x84] ss:$8 sps:$4 sm:$0xff]   ;;  %v1381_v37 = vld [vmem:[%s1739_s21 + $0x80] ss:$8 sps:$4 sm:$0xff]  }
  0x68   : > { %635 = vmatpush1.bf16.msra.mxu1 %v1346_v14  ;;  %450 = vmatprep.subr.bf16.mxu0 %v1347_v15  ;;  %v1376_v34 = vld [vmem:[%s1739_s21 + $0x130] ss:$8 sps:$4 sm:$0xff]   ;;  %v1379_v36 = vld [vmem:[%s1739_s21 + $0x144] ss:$8 sps:$4 sm:$0xff]   ;;  %v1382_v38 = vld [vmem:[%s1739_s21 + $0x140] ss:$8 sps:$4 sm:$0xff]  }
  0x69   : > { %636 = vmatprep.subr.bf16.mxu1 %v1349_v16  ;;  %v289_v39 = vld [vmem:[#allocation7] sm:$0xff]  ;;  %vm440_vm1 = vcmask 523264   ;;  %v1389_v45 = vld [vmem:[%s1739_s21 + $0xa4] ss:$8 sps:$4 sm:$0xff]   ;;  %v1393_v47 = vld [vmem:[%s1739_s21 + $0xa0] ss:$8 sps:$4 sm:$0xff]  }
  0x6a   : > { %v1383_v40 = vld [vmem:[%s1739_s21 + $0x94] ss:$8 sps:$4 sm:$0xff]   ;;  %v1119_v42 = vcombine.high %v289_v39, %v289_v39  ;;  %v1387_v43 = vld [vmem:[%s1739_s21 + $0x90] ss:$8 sps:$4 sm:$0xff]   ;;  %v1391_v46 = vld [vmem:[%s1739_s21 + $0x164] ss:$8 sps:$4 sm:$0xff]   ;;  %v1118_v54 = vcombine.low %v289_v39, %v289_v39 }
  0x6b   : > { %451 = vmatpush1.bf16.msra.mxu0 %v1351_v17  ;;  %v1385_v41 = vld [vmem:[%s1739_s21 + $0x154] ss:$8 sps:$4 sm:$0xff]   ;;  %v1388_v44 = vld [vmem:[%s1739_s21 + $0x150] ss:$8 sps:$4 sm:$0xff]   ;;  %v1394_v48 = vld [vmem:[%s1739_s21 + $0x160] ss:$8 sps:$4 sm:$0xff]  }
  0x6c   : > { %637 = vmatpush1.bf16.msra.mxu1 %v1352_v18  ;;  %452 = vmatprep.subr.bf16.mxu0 %v1353_v19  ;;  %v1395_v49 = vld [vmem:[%s1739_s21 + $0xb4] ss:$8 sps:$4 sm:$0xff]   ;;  %v1399_v51 = vld [vmem:[%s1739_s21 + $0xb0] ss:$8 sps:$4 sm:$0xff]   ;;  %v1405_v53 = vld [vmem:[%s1739_s21 + $0x184] ss:$8 sps:$4 sm:$0xff]  }
  0x6d   : > { %638 = vmatprep.subr.bf16.mxu1 %v1355_v20  ;;  %1144 = vmatprep.mubr.msk.bf16.mxu0 %vm440_vm1, %v1119_v42  ;;  %v1397_v50 = vld [vmem:[%s1739_s21 + $0x174] ss:$8 sps:$4 sm:$0xff]   ;;  %v1400_v52 = vld [vmem:[%s1739_s21 + $0x170] ss:$8 sps:$4 sm:$0xff]   ;;  %v1403_v55 = vld [vmem:[%s1739_s21 + $0x180] ss:$8 sps:$4 sm:$0xff]  }
  0x6e   : > { %1193 = vmatprep.mubr.msk.bf16.mxu1 %vm440_vm1, %v1119_v42  ;;  %v1408_v56 = vld [vmem:[%s1739_s21 + $0x194] ss:$8 sps:$4 sm:$0xff]   ;;  %v1406_v57 = vld [vmem:[%s1739_s21 + $0x190] ss:$8 sps:$4 sm:$0xff]   ;;  %v1411_v58 = vld [vmem:[%s1739_s21 + $0x1a4] ss:$8 sps:$4 sm:$0xff]  }
  0x6f   : > { %453 = vmatpush1.bf16.msra.mxu0 %v1357_v21  ;;  %v1409_v59 = vld [vmem:[%s1739_s21 + $0x1a0] ss:$8 sps:$4 sm:$0xff]   ;;  %v1414_v60 = vld [vmem:[%s1739_s21 + $0x1b4] ss:$8 sps:$4 sm:$0xff]   ;;  %v1412_v61 = vld [vmem:[%s1739_s21 + $0x1b0] ss:$8 sps:$4 sm:$0xff]  }
  0x70   : > { %639 = vmatpush1.bf16.msra.mxu1 %v1358_v22  ;;  %454 = vmatprep.subr.bf16.mxu0 %v1359_v23  ;;  %v1417_v62 = vld [vmem:[%s1739_s21 + $0x1c4] ss:$8 sps:$4 sm:$0xff]   ;;  %v1415_v63 = vld [vmem:[%s1739_s21 + $0x1c0] ss:$8 sps:$4 sm:$0xff]   ;;  %v1420_v0 = vld [vmem:[%s1739_s21 + $0x1d4] ss:$8 sps:$4 sm:$0xff]  }
  0x71   : > { %640 = vmatprep.subr.bf16.mxu1 %v1361_v24  ;;  %v1418_v1 = vld [vmem:[%s1739_s21 + $0x1d0] ss:$8 sps:$4 sm:$0xff]   ;;  %v1423_v2 = vld [vmem:[%s1739_s21 + $0x1e4] ss:$8 sps:$4 sm:$0xff]   ;;  %v1421_v3 = vld [vmem:[%s1739_s21 + $0x1e0] ss:$8 sps:$4 sm:$0xff]  }
  0x72   : > { %v1426_v4 = vld [vmem:[%s1739_s21 + $0x1f4] ss:$8 sps:$4 sm:$0xff]   ;;  %v1424_v5 = vld [vmem:[%s1739_s21 + $0x1f0] ss:$8 sps:$4 sm:$0xff]   ;;  %v1429_v6 = vld [vmem:[%s1739_s21 + $0x204] ss:$8 sps:$4 sm:$0xff]  }
  0x73   : > { %455 = vmatpush1.bf16.msra.mxu0 %v1363_v25  ;;  %v1427_v7 = vld [vmem:[%s1739_s21 + $0x200] ss:$8 sps:$4 sm:$0xff]   ;;  %v1432_v8 = vld [vmem:[%s1739_s21 + $0x214] ss:$8 sps:$4 sm:$0xff]   ;;  %v1430_v9 = vld [vmem:[%s1739_s21 + $0x210] ss:$8 sps:$4 sm:$0xff]  }
  0x74   : > { %641 = vmatpush1.bf16.msra.mxu1 %v1364_v26  ;;  %456 = vmatprep.subr.bf16.mxu0 %v1365_v27  ;;  %v1435_v10 = vld [vmem:[%s1739_s21 + $0x224] ss:$8 sps:$4 sm:$0xff]   ;;  %v1433_v11 = vld [vmem:[%s1739_s21 + $0x220] ss:$8 sps:$4 sm:$0xff]   ;;  %v1438_v12 = vld [vmem:[%s1739_s21 + $0x234] ss:$8 sps:$4 sm:$0xff]  }
  0x75   : > { %642 = vmatprep.subr.bf16.mxu1 %v1367_v28  ;;  %v1436_v13 = vld [vmem:[%s1739_s21 + $0x230] ss:$8 sps:$4 sm:$0xff]   ;;  %s1243_s23 = sshll.u32 %s1557_s18, 8  ;;  %vm896_vm2 = vcmask 7168   ;;  %p1244_p4 = scmp.ne.s32.totalorder %s1557_s18, 3 }
  0x77   : > { %457 = vmatpush1.bf16.msra.mxu0 %v1369_v29 }
  0x78   : > { %643 = vmatpush1.bf16.msra.mxu1 %v1370_v30  ;;  %458 = vmatprep.subr.bf16.mxu0 %v1371_v31  ;;  %v1575_v31 = vmov 0  }
  0x79   : > { %644 = vmatprep.subr.bf16.mxu1 %v1373_v32  ;;  %1327 = vset.pattern.permute.xlu0 %v1575_v31  ;;  %v863_v32 = vlaneseq }
  0x7a   : > { %1328 = vset.pattern.permute.xlu1 %v1575_v31 }
  0x7b   : > { %459 = vmatpush1.bf16.msra.mxu0 %v1375_v33  ;;  %v864_v33 = vand.u32 127, %v863_v32 }
  0x7c   : > { %645 = vmatpush1.bf16.msra.mxu1 %v1376_v34  ;;  %460 = vmatprep.subr.bf16.mxu0 %v1377_v35  ;;  %v866_v35 = vstv %s1243_s23 }
  0x7d   : > { %646 = vmatprep.subr.bf16.mxu1 %v1379_v36  ;;  %v865_v34 = vadd.s32 128, %v864_v33  ;;  %v1822_v36 = vld [vmem:[#allocation4] sm:$0xff] }
  0x7f   : > { %461 = vmatpush1.bf16.msra.mxu0 %v1381_v37  ;;  %v914_v37 = vld [vmem:[#allocation2] sm:$0xff]  ;;  %v868_v39 = vadd.s32 %v866_v35, %v865_v34 }
  0x80   : > { %647 = vmatpush1.bf16.msra.mxu1 %v1382_v38  ;;  %462 = vmatprep.subr.bf16.mxu0 %v1383_v40  ;;  %v867_v38 = vadd.s32 %v866_v35, %v864_v33 }
  0x81   : > { %648 = vmatprep.subr.bf16.mxu1 %v1385_v41 }
  0x83   : > { %463 = vmatpush1.bf16.msra.mxu0 %v1387_v43 }
  0x84   : > { %649 = vmatpush1.bf16.msra.mxu1 %v1388_v44  ;;  %464 = vmatprep.subr.bf16.mxu0 %v1389_v45 }
  0x85   : > { %650 = vmatprep.subr.bf16.mxu1 %v1391_v46 }
  0x87   : > { %465 = vmatpush1.bf16.msra.mxu0 %v1393_v47 }
  0x88   : > { %651 = vmatpush1.bf16.msra.mxu1 %v1394_v48  ;;  %466 = vmatprep.subr.bf16.mxu0 %v1395_v49  ;;  %v861_v49 = vld [vmem:[%s1865_s0] sm:$0xff] }
  0x89   : > { %652 = vmatprep.subr.bf16.mxu1 %v1397_v50 }
  0x8b   : > { %467 = vmatpush1.bf16.msra.mxu0 %v1399_v51 }
  0x8c   : > { %653 = vmatpush1.bf16.msra.mxu1 %v1400_v52  ;;  %818 = vmatprep.subr.bf16.mxu0 %v1405_v53 }
  0x8e   : > { %477 = vmatmul.mubr.bf16.vlgmr.msra.gmra.mrb[0].mxu0 %v1118_v54 }
  0x8f   : > { %663 = vmatmul.mubr.bf16.vlgmr.msra.gmra.mrb[0].mxu1 %v1118_v54  ;;  %819 = vmatpush1.bf16.msra.mxu0 %v1403_v55 }
  0x90   : > { %1242 = vmatprep.mubr.msk.bf16.mxu0 %vm440_vm1, %v1119_v42  ;;  %820 = vmatprep.subr.bf16.mxu0 %v1408_v56 }
  0x93   : > { %821 = vmatpush1.bf16.msra.mxu0 %v1406_v57 }
  0x94   : > { %822 = vmatprep.subr.bf16.mxu0 %v1411_v58 }
  0x97   : > { %823 = vmatpush1.bf16.msra.mxu0 %v1409_v59 }
  0x98   : > { %824 = vmatprep.subr.bf16.mxu0 %v1414_v60 }
  0x9b   : > { %825 = vmatpush1.bf16.msra.mxu0 %v1412_v61 }
  0x9c   : > { %826 = vmatprep.subr.bf16.mxu0 %v1417_v62 }
  0x9f   : > { %827 = vmatpush1.bf16.msra.mxu0 %v1415_v63 }
  0xa0   : > { %828 = vmatprep.subr.bf16.mxu0 %v1420_v0 }
  0xa3   : > { %829 = vmatpush1.bf16.msra.mxu0 %v1418_v1 }
  0xa4   : > { %830 = vmatprep.subr.bf16.mxu0 %v1423_v2 }
  0xa7   : > { %831 = vmatpush1.bf16.msra.mxu0 %v1421_v3 }
  0xa8   : > { %832 = vmatprep.subr.bf16.mxu0 %v1426_v4 }
  0xab   : > { %833 = vmatpush1.bf16.msra.mxu0 %v1424_v5 }
  0xac   : > { %834 = vmatprep.subr.bf16.mxu0 %v1429_v6  ;;  %v919_v6 = vld [vmem:[#allocation3] sm:$0xff] }
  0xaf   : > { %835 = vmatpush1.bf16.msra.mxu0 %v1427_v7 }
  0xb0   : > { %836 = vmatprep.subr.bf16.mxu0 %v1432_v8 }
  0xb3   : > { %837 = vmatpush1.bf16.msra.mxu0 %v1430_v9  ;;  %v894_v9 = vld [vmem:[#allocation5] sm:$0xff] }
  0xb4   : > { %838 = vmatprep.subr.bf16.mxu0 %v1435_v10 }
  0xb7   : > { %839 = vmatpush1.bf16.msra.mxu0 %v1433_v11 }
  0xb8   : > { %840 = vmatprep.subr.bf16.mxu0 %v1438_v12 }
  0xbb   : > { %841 = vmatpush1.bf16.msra.mxu0 %v1436_v13  ;;  %v906_v13 = vld [vmem:[#allocation6] sm:$0xff] }
  0xbe   : > { %851 = vmatmul.mubr.bf16.vlgmr.msra.gmra.mrb[4].mxu0 %v1118_v54 }
 0x161   : > { %v478_v14 = vpop.f32.mrb[0].mxu0 }
 0x162   : > { %v664_v15 = vpop.f32.mrb[0].mxu1  ;;  %v480_v17 = vpop.f32.mrb[1].mxu0 }
 0x163   : > { %v671_v16 = vmax.f32 %v478_v14, %v664_v15  ;;  %v666_v18 = vpop.f32.mrb[1].mxu1  ;;  %v482_v20 = vpop.f32.mrb[2].mxu0 }
 0x164   : > { %v672_v19 = vmax.f32 %v480_v17, %v666_v18  ;;  %v668_v21 = vpop.f32.mrb[2].mxu1  ;;  %v483_v22 = vpop.f32.mrb[3].mxu0 }
 0x165   : > { %v669_v23 = vpop.f32.mrb[3].mxu1  ;;  %v1576_v22 = vmov (!%p1244_p4), 0  }
 0x191   : > { %v852_v24 = vpop.f32.mrb[4].mxu0 }
 0x192   : > { %v859_v25 = vmax.f32 %v671_v16, %v852_v24  ;;  %v854_v26 = vpop.f32.mrb[5].mxu0 }
 0x193   : > { %v860_v27 = vmax.f32 %v672_v19, %v854_v26  ;;  %v856_v28 = vpop.f32.mrb[6].mxu0 }
 0x194   : > { %v857_v29 = vpop.f32.mrb[7].mxu0 }
 0x195   : > { %v869_v30 = vmax.f32 %v859_v25, %v860_v27 }
 0x197   : > { %870 = vmax.xlane.f32.xlu0 %v869_v30 }
 0x224   : > { %v871_v40 = vpop.xlane.xlu0 %870 }
 0x225   : > { %vm893_vm3 = vcmp.gt.f32.partialorder %v871_v40, %v1822_v36  ;;  %v915_v41 = vmax.f32 %v914_v37, %v871_v40  ;;  %vm872_vm4 = vcmp.eq.f32.partialorder %v859_v25, %v871_v40  ;;  %vm873_vm5 = vcmp.eq.f32.partialorder %v860_v27, %v871_v40 }
 0x226   : > { %v899_v42 = vsel %vm893_vm3, %v871_v40, %v1822_v36  ;;  %v874_v43 = vsel %vm872_vm4, %v867_v38, 1024  ;;  %v875_v44 = vsel %vm873_vm5, %v868_v39, 1024 }
 0x227   : > { %923 = vperm.xlu0 %1327, %v915_v41   ;;  %900 = vst.msk [vmem:[#allocation4] sm:$0xff] %vm896_vm2, %v899_v42  ;;  %v916_v45 = vsub.f32 %v914_v37, %v915_v41  ;;  %937 = vst.msk [vmem:[#allocation2] sm:$0xff] %vm896_vm2, %v915_v41  ;;  %vm876_vm6 = vcmp.lt.s32.totalorder %v874_v43, %v875_v44 }
 0x228   : > { %v877_v46 = vsel %vm876_vm6, %v874_v43, %v875_v44 }
 0x229   : > { %v879_v47 = vshra.s32 %v877_v46, 16  ;;  %v878_v55 = vand.u32 65535, %v877_v46  ;;  %v917_v2 = vmul.f32 1.442695, %v916_v45 }
 0x22b   : > { %v881_v48 = vcvt.s32.f32 %v879_v47  ;;  %v880_v57 = vcvt.s32.f32 %v878_v55 }
 0x22d   : > { %882 = vmin.xlane.f32.xlu1 %v881_v48 }
 0x22e   : > { %v961_v34 = vld [vmem:[#allocation2] sm:$0xff] (!%p1244_p4) }
 0x23e   : > { %902 = vperm.xlu1 %1328, %v861_v49  }
 0x2a6   : > { %v924_v50 = vpop.permute.xlu0 %923 }
 0x2a7   : > { %v926_v51 = vsub.f32 %v859_v25, %v924_v50  ;;  %v927_v52 = vsub.f32 %v860_v27, %v924_v50 }
 0x2a9   : > { %v928_v53 = vmul.f32 1.442695, %v926_v51  ;;  %v930_v54 = vmul.f32 1.442695, %v927_v52 }
 0x2ab   : > { %1439 = vpow2.f32 %v928_v53 }
 0x2ac   : > { %1441 = vpow2.f32 %v930_v54 }
 0x2ad   : > { %1443 = vpow2.f32 %v917_v2 }
 0x2b5   : > { %v1440_v58 = vpop.eup %1439 }
 0x2b6   : > { %v1442_v59 = vpop.eup %1441 }
 0x2b7   : > { %v932_v62 = vadd.f32 %v1442_v59, %v1440_v58  ;;  %v1444_v4 = vpop.eup %1443 }
 0x2b8   : > { %v920_v11 = vmul.f32 %v1444_v4, %v919_v6 }
 0x2ba   : > { %v883_v56 = vpop.xlane.xlu1 %882 }
 0x2bb   : > { %vm884_vm7 = vcmp.eq.f32.partialorder %v881_v48, %v883_v56  ;;  %v889_v3 = vcvt.f32.s32 %v883_v56 }
 0x2bc   : > { %v885_v60 = vsel %vm884_vm7, %v880_v57, inf }
 0x2bd   : > { %886 = vmin.xlane.f32.xlu1 %v885_v60  ;;  %v890_v7 = vshll.u32 %v889_v3, 16 }
 0x2be   : > { %v903_v61 = vpop.permute.xlu1 %902 }
 0x2bf   : > { %vm904_vm8 = vcmp.eq.s32.totalorder %v867_v38, %v903_v61  ;;  %vm905_vm9 = vcmp.eq.s32.totalorder %v868_v39, %v903_v61 }
 0x2c0   : > { %v907_v63 = vsel %vm904_vm8, %v859_v25, 0.0  ;;  %v908_v0 = vsel %vm905_vm9, %v860_v27, 0.0 }
 0x2c1   : > { %933 = vadd.xlane.f32.xlu1 %v932_v62  ;;  %v909_v1 = vadd.f32 %v908_v0, %v907_v63 }
 0x2c3   : > { %910 = vadd.xlane.f32.xlu0 %v909_v1 }
 0x34a   : > { %v887_v5 = vpop.xlane.xlu1 %886 }
 0x34b   : > { %v888_v8 = vcvt.f32.s32 %v887_v5 }
 0x34d   : > { %v891_v10 = vadd.s32 %v890_v7, %v888_v8  ;;  %941 = sbr.rel (%p1244_p4) target bundleno = 928 (0x3a0), region = 48 }
 0x34e   : > { %v934_v12 = vpop.xlane.xlu1 %933 }
 0x34f   : > { %v895_v14 = vsel %vm893_vm3, %v891_v10, %v894_v9  ;;  %v935_v15 = vadd.f32 %v934_v12, %v920_v11 }
 0x350   : > { %897 = vst.msk [vmem:[#allocation5] sm:$0xff] %vm896_vm2, %v895_v14  ;;  %v911_v16 = vpop.xlane.xlu0 %910 }
 0x351   : > { %936 = vst.msk [vmem:[#allocation3] sm:$0xff] %vm896_vm2, %v935_v15  ;;  %v912_v17 = vadd.f32 %v911_v16, %v906_v13 }
 0x353   : > { %913 = vst.msk [vmem:[#allocation6] sm:$0xff] %vm896_vm2, %v912_v17 }
 0x357   : > { %v977_v20 = vld [vmem:[#allocation5] sm:$0xff] }
 0x358   : > { %vm978_vm10 = vcmp.eq.s32.totalorder %v977_v20, %v861_v49  ;;  %v962_v42 = vld [vmem:[#allocation3] sm:$0xff] }
 0x359   : > { %v979_v23 = vsel %vm978_vm10, 1, %v1576_v22 }
 0x35a   : > { %v942_v18 = vld [vmem:[#allocation6] sm:$0xff]  ;;  %980 = vst.msk [vmem:[%s1869_s4] sm:$0xff] %vm896_vm2, %v979_v23 }
 0x35b   : > { %v943_v19 = vmul.f32 0.03125, %v942_v18  ;;  %v967_v36 = vsub.f32 %v942_v18, %v961_v34 }
 0x35d   : > { %v944_v21 = vmul.f32 %v943_v19, %v943_v19  ;;  %v954_v30 = vmul.f32 0.9800666, %v943_v19  ;;  %v1245_v33 = vadd.f32 -0.039733864, %v943_v19  ;;  %vm957_vm13 = vcmp.gt.f32.partialorder %v943_v19, -0.9800666 }
 0x35e   : > { %v968_v39 = vmul.f32 1.442695, %v967_v36 }
 0x35f   : > { %v945_v24 = vsub.f32 1.0, %v944_v21 }
 0x361   : > { %v946_v25 = vmax.f32 %v945_v24, 0.0 }
 0x363   : > { %1445 = vrsqrt.f32 %v946_v25  ;;  %vm949_vm11 = vcmp.eq.f32.partialorder %v946_v25, inf  ;;  %v952_v27 = vand.u32 2147483648, %v946_v25  ;;  %vm951_vm12 = vcmp.eq.f32.partialorder %v946_v25, 0.0 }
 0x364   : > { %1447 = vpow2.f32 %v968_v39 }
 0x36d   : > { %v1446_v26 = vpop.eup %1445 }
 0x36e   : > { %v948_v28 = vmul.f32 %v1446_v26, %v946_v25  ;;  %v1448_v43 = vpop.eup %1447 }
 0x370   : > { %v950_v29 = vsel %vm949_vm11, %v946_v25, %v948_v28 }
 0x371   : > { %v953_v31 = vsel %vm951_vm12, %v952_v27, %v950_v29 }
 0x372   : > { %v955_v32 = vmul.f32 0.19866933, %v953_v31 }
 0x374   : > { %v956_v35 = vsub.f32 %v954_v30, %v955_v32 }
 0x376   : > { %v959_v37 = vsel %vm957_vm13, %v956_v35, %v1245_v33 }
 0x377   : > { %v960_v38 = vmul.f32 32.0, %v959_v37 }
 0x379   : > { %v963_v40 = vsub.f32 %v960_v38, %v961_v34 }
 0x37b   : > { %v964_v41 = vmul.f32 1.442695, %v963_v40 }
 0x37d   : > { %1449 = vpow2.f32 %v964_v41 }
 0x387   : > { %v1450_v44 = vpop.eup %1449 }
 0x388   : > { %v966_v45 = vadd.f32 %v1450_v44, %v962_v42 }
 0x38a   : > { %v970_v46 = vsub.f32 %v966_v45, %v1448_v43 }
 0x38c   : > { %v971_v47 = vmax.f32 %v970_v46, 1e-30 }
 0x38e   : > { %1451 = vlog2.f32 %v971_v47 }
 0x398   : > { %v1452_v48 = vpop.eup %1451 }
 0x399   : > { %v973_v49 = vmul.f32 0.6931472, %v1452_v48 }
 0x39b   : > { %v974_v50 = vadd.f32 %v973_v49, %v961_v34 }
 0x39d   : > { %v975_v51 = vsub.f32 %v974_v50, %v960_v38 }
 0x39f   : > { %976 = vst.msk [vmem:[%s1868_s3] sm:$0xff] %vm896_vm2, %v975_v51 }
 0x3a0 PF: > { %s19_s20 = sadd.s32 1, %s1565_s20   ;;  %s1884_s10 = smov %s1891_s15 }
 0x3a1   : > { %p16_p7 = scmp.ge.s32.totalorder %s19_s20, 6   ;;  %s1885_s15 = smov %s1549_s16 }
 0x3a2   : > { %s1886_s16 = smov %s1553_s17  ;;  %s1887_s17 = smov %s1700_s9 }
 0x3a3   : > { %s1888_s18 = smov %s1561_s19  ;;  %s1889_s19 = smov %s1884_s10 }
 0x3a4   :  { %18 = sbr.rel (!%p16_p7) target bundleno = 5 (0x5), region = 103 }
 0x3ab   :  { %1014 = vsyncpa [#allocation8], 1 }
 0x3ac   :  { %1016 = vsyncpa [#allocation8 + $0x1], 1 }
 0x3ad   :  { %1017 = vsyncpa [#allocation10], 1 }
 0x3ae   :  { %1019 = vsyncpa [#allocation10 + $0x1], 1 }

</bundles_post_ra>
